<compile_context>
chip_gen: v7x
topology: tpu7x:2x2x1
jax: 0.10.0
libtpu: 0.0.40
codegen_flags: <defaults>
</compile_context>

<pallas_src>
import jax
import jax.numpy as jnp
from jax.experimental import pallas as pl
from jax.experimental.pallas import tpu as pltpu


def _round_up(v, m):
    return (v + m - 1) // m * m


def discriminator_kernel(x_ref, h_ref, w1x_ref, w1h_ref, b1_ref,
                         w2_ref, b2_ref, w3_ref, b3_ref, o_ref):
    # fc1 (split weights => no HBM concat); bf16 operands, f32 accumulation.
    x = x_ref[...].astype(jnp.bfloat16)                          # (TB, dim)
    h = h_ref[...].astype(jnp.bfloat16)                          # (TB, dim)
    a1 = jnp.dot(x, w1x_ref[...], preferred_element_type=jnp.float32)
    a1 = a1 + jnp.dot(h, w1h_ref[...], preferred_element_type=jnp.float32)
    h1 = jnp.maximum(a1 + b1_ref[...], 0.0)                      # f32 epilogue

    # fc2 + ReLU
    a2 = jnp.dot(h1.astype(jnp.bfloat16), w2_ref[...],
                 preferred_element_type=jnp.float32)
    h2 = jnp.maximum(a2 + b2_ref[...], 0.0)

    # fc3 + Sigmoid (lane-dense padded output store)
    a3 = jnp.dot(h2.astype(jnp.bfloat16), w3_ref[...],
                 preferred_element_type=jnp.float32)
    o_ref[...] = jax.nn.sigmoid(a3 + b3_ref[...]).astype(o_ref.dtype)


def discriminator_forward(x, h, params, *, block_b=128):
    """x: (B, dim), h: (B, dim). Returns (B, n_out) f32 probabilities."""
    B, dim = x.shape
    w1x, w1h = params["w1x"], params["w1h"]
    b1, w2, b2 = params["b1"], params["w2"], params["b2"]
    w3, b3 = params["w3"], params["b3"]
    n_out = params["n_out"]
    h1p, h2p, nop = w1x.shape[1], w2.shape[1], w3.shape[1]

    # Batch tile: multiple of 8 sublanes; pad the batch so every tile is full.
    tb = min(block_b, _round_up(B, 8))
    bp = _round_up(B, tb)
    if bp != B:
        pad = bp - B
        x = jnp.pad(x, ((0, pad), (0, 0)))
        h = jnp.pad(h, ((0, pad), (0, 0)))

    flops = 2 * bp * (2 * dim * h1p + h1p * h2p + h2p * nop)
    bytes_accessed = ((x.size + h.size) * 4                 # activations (f32)
                      + (w1x.size + w1h.size + w2.size + w3.size) * 2  # bf16 weights
                      + (b1.size + b2.size + b3.size) * 4   # f32 biases
                      + bp * nop * 4)                        # output

    out = pl.pallas_call(
        discriminator_kernel,
        out_shape=jax.ShapeDtypeStruct((bp, nop), jnp.float32),
        grid_spec=pltpu.PrefetchScalarGridSpec(
            num_scalar_prefetch=0,
            grid=(bp // tb,),
            in_specs=[
                pl.BlockSpec((tb, dim), lambda i: (i, 0)),   # x tile
                pl.BlockSpec((tb, dim), lambda i: (i, 0)),   # h tile
                pl.BlockSpec((dim, h1p), lambda i: (0, 0)),  # W1x (resident)
                pl.BlockSpec((dim, h1p), lambda i: (0, 0)),  # W1h (resident)
                pl.BlockSpec((1, h1p), lambda i: (0, 0)),    # b1
                pl.BlockSpec((h1p, h2p), lambda i: (0, 0)),  # W2 (resident)
                pl.BlockSpec((1, h2p), lambda i: (0, 0)),    # b2
                pl.BlockSpec((h2p, nop), lambda i: (0, 0)),  # W3 (resident)
                pl.BlockSpec((1, nop), lambda i: (0, 0)),    # b3
            ],
            out_specs=pl.BlockSpec((tb, nop), lambda i: (i, 0)),
        ),
        compiler_params=pltpu.CompilerParams(
            dimension_semantics=("parallel",)),
        cost_estimate=pl.CostEstimate(
            flops=flops, transcendentals=bp * nop,
            bytes_accessed=bytes_accessed),
    )(x, h, w1x, w1h, b1, w2, b2, w3, b3)

    # Slice off batch padding and the lane padding of the output features.
    return out[:B, :n_out]


def init_params(key, dim, n_h1, n_h2, n_out, *, lane=128):
    """Xavier-normal weights (as in weights_init), PyTorch-default-style
    uniform biases. Weights are stored (in, out), split for fc1, zero-padded
    to 128-lane feature dims, and cast to bf16 for the MXU; biases stay f32."""
    keys = jax.random.split(key, 6)
    n_in = 2 * dim
    h1p, h2p, nop = (_round_up(n_h1, lane), _round_up(n_h2, lane),
                     _round_up(n_out, lane))

    def xavier_normal(k, fan_in, fan_out):
        std = (2.0 / (fan_in + fan_out)) ** 0.5
        return std * jax.random.normal(k, (fan_in, fan_out), dtype=jnp.float32)

    def bias(k, fan_in, fan_out):
        bound = 1.0 / (fan_in ** 0.5)
        return jax.random.uniform(k, (1, fan_out), dtype=jnp.float32,
                                  minval=-bound, maxval=bound)

    w1 = xavier_normal(keys[0], n_in, n_h1)
    b1 = bias(keys[1], n_in, n_h1)
    w2 = xavier_normal(keys[2], n_h1, n_h2)
    b2 = bias(keys[3], n_h1, n_h2)
    w3 = xavier_normal(keys[4], n_h2, n_out)
    b3 = bias(keys[5], n_h2, n_out)

    def pad_w(w, rp, cp):
        r, c = w.shape
        return jnp.pad(w, ((0, rp - r), (0, cp - c))).astype(jnp.bfloat16)

    def pad_b(b, cp):
        return jnp.pad(b, ((0, 0), (0, cp - b.shape[1])))    # stays f32

    return {
        "w1x": pad_w(w1[:dim], dim, h1p),
        "w1h": pad_w(w1[dim:], dim, h1p),
        "b1": pad_b(b1, h1p),
        "w2": pad_w(w2, h1p, h2p),
        "b2": pad_b(b2, h2p),
        "w3": pad_w(w3, h2p, nop),
        "b3": pad_b(b3, nop),
        "n_out": n_out,
    }


def _reference(x, h, params):
    """Pure-JAX reference with the exact same math (bf16 matmuls, f32 acc)."""
    xb = x.astype(jnp.bfloat16)
    hb = h.astype(jnp.bfloat16)
    a1 = (jnp.dot(xb, params["w1x"], preferred_element_type=jnp.float32)
          + jnp.dot(hb, params["w1h"], preferred_element_type=jnp.float32))
    r1 = jnp.maximum(a1 + params["b1"], 0.0)
    a2 = jnp.dot(r1.astype(jnp.bfloat16), params["w2"],
                 preferred_element_type=jnp.float32)
    r2 = jnp.maximum(a2 + params["b2"], 0.0)
    a3 = jnp.dot(r2.astype(jnp.bfloat16), params["w3"],
                 preferred_element_type=jnp.float32)
    return jax.nn.sigmoid(a3 + params["b3"])[:, :params["n_out"]]


if __name__ == "__main__":
    # GAIN discriminator: x and h each have `dim` features, n_in = 2*dim.
    # batch=200 exercises batch padding + a 2-step pipelined grid (TB=128).
    batch, dim = 200, 16
    n_h1, n_h2, n_out = 32, 32, dim

    key = jax.random.PRNGKey(0)
    k_x, k_h, k_p = jax.random.split(key, 3)

    x = jax.random.normal(k_x, (batch, dim), dtype=jnp.float32)
    h = jax.random.bernoulli(k_h, 0.5, (batch, dim)).astype(jnp.float32)
    params = init_params(k_p, dim, n_h1, n_h2, n_out)

    out = discriminator_forward(x, h, params)
    out = jax.block_until_ready(out)

    ref = _reference(x, h, params)
    assert out.shape == (batch, n_out)
    assert jnp.allclose(out, ref, atol=1e-3, rtol=1e-3), (
        float(jnp.max(jnp.abs(out - ref))))

    print("KERNEL_OK")
</pallas_src>

<mosaic_0001>
module attributes {stable_mosaic.version = 11 : i64} {
  func.func @discriminator_kernel(%arg0: i32, %arg1: memref<128x16xf32, #tpu.memory_space<vmem>>, %arg2: memref<128x16xf32, #tpu.memory_space<vmem>>, %arg3: memref<16x128xbf16, #tpu.memory_space<vmem>>, %arg4: memref<16x128xbf16, #tpu.memory_space<vmem>>, %arg5: memref<1x128xf32, #tpu.memory_space<vmem>>, %arg6: memref<128x128xbf16, #tpu.memory_space<vmem>>, %arg7: memref<1x128xf32, #tpu.memory_space<vmem>>, %arg8: memref<128x128xbf16, #tpu.memory_space<vmem>>, %arg9: memref<1x128xf32, #tpu.memory_space<vmem>>, %arg10: memref<128x128xf32, #tpu.memory_space<vmem>>) attributes {dimension_semantics = [#tpu.dimension_semantics<parallel>], iteration_bounds = array<i64: 2>, scalar_prefetch = 0 : i64, scratch_operands = 0 : i64, tpu.core_type = #tpu.core_type<tc>, window_params = [{transform_indices = @transform_0, window_bounds = array<i64: 128, 16>}, {transform_indices = @transform_1, window_bounds = array<i64: 128, 16>}, {pipeline_mode = #tpu.pipeline_mode<synchronous>, transform_indices = @transform_2, window_bounds = array<i64: 16, 128>}, {pipeline_mode = #tpu.pipeline_mode<synchronous>, transform_indices = @transform_3, window_bounds = array<i64: 16, 128>}, {pipeline_mode = #tpu.pipeline_mode<synchronous>, transform_indices = @transform_4, window_bounds = array<i64: 1, 128>}, {pipeline_mode = #tpu.pipeline_mode<synchronous>, transform_indices = @transform_5, window_bounds = array<i64: 128, 128>}, {pipeline_mode = #tpu.pipeline_mode<synchronous>, transform_indices = @transform_6, window_bounds = array<i64: 1, 128>}, {pipeline_mode = #tpu.pipeline_mode<synchronous>, transform_indices = @transform_7, window_bounds = array<i64: 128, 128>}, {pipeline_mode = #tpu.pipeline_mode<synchronous>, transform_indices = @transform_8, window_bounds = array<i64: 1, 128>}, {transform_indices = @transform_9, window_bounds = array<i64: 128, 128>}]} {
    %c0 = arith.constant 0 : index
    %c0_0 = arith.constant 0 : index
    %0 = vector.load %arg1[%c0, %c0_0] : memref<128x16xf32, #tpu.memory_space<vmem>>, vector<128x16xf32>
    %1 = arith.truncf %0 : vector<128x16xf32> to vector<128x16xbf16>
    %c0_1 = arith.constant 0 : index
    %c0_2 = arith.constant 0 : index
    %2 = vector.load %arg2[%c0_1, %c0_2] : memref<128x16xf32, #tpu.memory_space<vmem>>, vector<128x16xf32>
    %3 = arith.truncf %2 : vector<128x16xf32> to vector<128x16xbf16>
    %c0_3 = arith.constant 0 : index
    %c0_4 = arith.constant 0 : index
    %4 = vector.load %arg3[%c0_3, %c0_4] : memref<16x128xbf16, #tpu.memory_space<vmem>>, vector<16x128xbf16>
    %cst = arith.constant dense<0.000000e+00> : vector<128x128xf32>
    %5 = tpu.matmul %1, %4, %cst {dimension_numbers = #tpu.dot_dimension_numbers<[1], [0], [0], [1], [0, 0, 1, 1], [], []>} : vector<128x16xbf16>, vector<16x128xbf16>, vector<128x128xf32> -> vector<128x128xf32>
    %c0_5 = arith.constant 0 : index
    %c0_6 = arith.constant 0 : index
    %6 = vector.load %arg4[%c0_5, %c0_6] : memref<16x128xbf16, #tpu.memory_space<vmem>>, vector<16x128xbf16>
    %cst_7 = arith.constant dense<0.000000e+00> : vector<128x128xf32>
    %7 = tpu.matmul %3, %6, %cst_7 {dimension_numbers = #tpu.dot_dimension_numbers<[1], [0], [0], [1], [0, 0, 1, 1], [], []>} : vector<128x16xbf16>, vector<16x128xbf16>, vector<128x128xf32> -> vector<128x128xf32>
    %8 = arith.addf %5, %7 : vector<128x128xf32>
    %c0_8 = arith.constant 0 : index
    %c0_9 = arith.constant 0 : index
    %9 = vector.load %arg5[%c0_8, %c0_9] : memref<1x128xf32, #tpu.memory_space<vmem>>, vector<1x128xf32>
    %10 = vector.broadcast %9 : vector<1x128xf32> to vector<128x128xf32>
    %11 = arith.addf %8, %10 : vector<128x128xf32>
    %cst_10 = arith.constant 0.000000e+00 : f32
    %12 = vector.broadcast %cst_10 : f32 to vector<128x128xf32>
    %13 = arith.maximumf %11, %12 : vector<128x128xf32>
    %14 = arith.truncf %13 : vector<128x128xf32> to vector<128x128xbf16>
    %c0_11 = arith.constant 0 : index
    %c0_12 = arith.constant 0 : index
    %15 = vector.load %arg6[%c0_11, %c0_12] : memref<128x128xbf16, #tpu.memory_space<vmem>>, vector<128x128xbf16>
    %cst_13 = arith.constant dense<0.000000e+00> : vector<128x128xf32>
    %16 = tpu.matmul %14, %15, %cst_13 {dimension_numbers = #tpu.dot_dimension_numbers<[1], [0], [0], [1], [0, 0, 1, 1], [], []>} : vector<128x128xbf16>, vector<128x128xbf16>, vector<128x128xf32> -> vector<128x128xf32>
    %c0_14 = arith.constant 0 : index
    %c0_15 = arith.constant 0 : index
    %17 = vector.load %arg7[%c0_14, %c0_15] : memref<1x128xf32, #tpu.memory_space<vmem>>, vector<1x128xf32>
    %18 = vector.broadcast %17 : vector<1x128xf32> to vector<128x128xf32>
    %19 = arith.addf %16, %18 : vector<128x128xf32>
    %cst_16 = arith.constant 0.000000e+00 : f32
    %20 = vector.broadcast %cst_16 : f32 to vector<128x128xf32>
    %21 = arith.maximumf %19, %20 : vector<128x128xf32>
    %22 = arith.truncf %21 : vector<128x128xf32> to vector<128x128xbf16>
    %c0_17 = arith.constant 0 : index
    %c0_18 = arith.constant 0 : index
    %23 = vector.load %arg8[%c0_17, %c0_18] : memref<128x128xbf16, #tpu.memory_space<vmem>>, vector<128x128xbf16>
    %cst_19 = arith.constant dense<0.000000e+00> : vector<128x128xf32>
    %24 = tpu.matmul %22, %23, %cst_19 {dimension_numbers = #tpu.dot_dimension_numbers<[1], [0], [0], [1], [0, 0, 1, 1], [], []>} : vector<128x128xbf16>, vector<128x128xbf16>, vector<128x128xf32> -> vector<128x128xf32>
    %c0_20 = arith.constant 0 : index
    %c0_21 = arith.constant 0 : index
    %25 = vector.load %arg9[%c0_20, %c0_21] : memref<1x128xf32, #tpu.memory_space<vmem>>, vector<1x128xf32>
    %26 = vector.broadcast %25 : vector<1x128xf32> to vector<128x128xf32>
    %27 = arith.addf %24, %26 : vector<128x128xf32>
    %28 = arith.negf %27 : vector<128x128xf32>
    %29 = math.exp %28 : vector<128x128xf32>
    %cst_22 = arith.constant 1.000000e+00 : f32
    %30 = vector.broadcast %cst_22 : f32 to vector<128x128xf32>
    %31 = arith.addf %30, %29 : vector<128x128xf32>
    %32 = arith.divf %30, %31 : vector<128x128xf32>
    %c0_23 = arith.constant 0 : index
    %c0_24 = arith.constant 0 : index
    %33 = vector.load %arg10[%c0_23, %c0_24] : memref<128x128xf32, #tpu.memory_space<vmem>>, vector<128x128xf32>
    tpu.vector_store %arg10[%c0_23, %c0_24], %32 {strides = array<i32>} : memref<128x128xf32, #tpu.memory_space<vmem>>, vector<128x128xf32>,
    return
  }
  func.func @transform_0(%arg0: i32) -> (i32, i32) {
    %c0_i32 = arith.constant 0 : i32
    %c0_i32_0 = arith.constant 0 : i32
    return %arg0, %c0_i32 : i32, i32
  }
  func.func @transform_1(%arg0: i32) -> (i32, i32) {
    %c0_i32 = arith.constant 0 : i32
    %c0_i32_0 = arith.constant 0 : i32
    return %arg0, %c0_i32 : i32, i32
  }
  func.func @transform_2(%arg0: i32) -> (i32, i32) {
    %c0_i32 = arith.constant 0 : i32
    %c0_i32_0 = arith.constant 0 : i32
    %c0_i32_1 = arith.constant 0 : i32
    return %c0_i32, %c0_i32_0 : i32, i32
  }
  func.func @transform_3(%arg0: i32) -> (i32, i32) {
    %c0_i32 = arith.constant 0 : i32
    %c0_i32_0 = arith.constant 0 : i32
    %c0_i32_1 = arith.constant 0 : i32
    return %c0_i32, %c0_i32_0 : i32, i32
  }
  func.func @transform_4(%arg0: i32) -> (i32, i32) {
    %c0_i32 = arith.constant 0 : i32
    %c0_i32_0 = arith.constant 0 : i32
    %c0_i32_1 = arith.constant 0 : i32
    return %c0_i32, %c0_i32_0 : i32, i32
  }
  func.func @transform_5(%arg0: i32) -> (i32, i32) {
    %c0_i32 = arith.constant 0 : i32
    %c0_i32_0 = arith.constant 0 : i32
    %c0_i32_1 = arith.constant 0 : i32
    return %c0_i32, %c0_i32_0 : i32, i32
  }
  func.func @transform_6(%arg0: i32) -> (i32, i32) {
    %c0_i32 = arith.constant 0 : i32
    %c0_i32_0 = arith.constant 0 : i32
    %c0_i32_1 = arith.constant 0 : i32
    return %c0_i32, %c0_i32_0 : i32, i32
  }
  func.func @transform_7(%arg0: i32) -> (i32, i32) {
    %c0_i32 = arith.constant 0 : i32
    %c0_i32_0 = arith.constant 0 : i32
    %c0_i32_1 = arith.constant 0 : i32
    return %c0_i32, %c0_i32_0 : i32, i32
  }
  func.func @transform_8(%arg0: i32) -> (i32, i32) {
    %c0_i32 = arith.constant 0 : i32
    %c0_i32_0 = arith.constant 0 : i32
    %c0_i32_1 = arith.constant 0 : i32
    return %c0_i32, %c0_i32_0 : i32, i32
  }
  func.func @transform_9(%arg0: i32) -> (i32, i32) {
    %c0_i32 = arith.constant 0 : i32
    %c0_i32_0 = arith.constant 0 : i32
    return %arg0, %c0_i32 : i32, i32
  }
}

</mosaic_0001>

<bundles_post_ra>
// kernel: tpu_custom_call.1
= control target key start
LH: loop header
LB: loop body
LE: loop exit
PB: predicated region body
PF: predicated region fallthrough
CT: control target
= control target key end

     0   :  { %14 = vsyncpa [#allocation3], 0  ;;  %s2065_s0 = inlined_call_operand.vmem [shape: f32[256,16], index: 0, kind: input, shape index: {}]   ;;  %s2066_s1 = inlined_call_operand.vmem [shape: f32[256,16], index: 1, kind: input, shape index: {}]   ;;  %s2067_s2 = inlined_call_operand.vmem [shape: bf16[16,128], index: 2, kind: input, shape index: {}]   ;;  %s2068_s3 = inlined_call_operand.vmem [shape: bf16[16,128], index: 3, kind: input, shape index: {}]   ;;  %s2069_s4 = inlined_call_operand.vmem [shape: f32[1,128], index: 4, kind: input, shape index: {}]   ;;  %s2070_s5 = inlined_call_operand.vmem [shape: bf16[128,128], index: 5, kind: input, shape index: {}]   ;;  %s2071_s6 = inlined_call_operand.vmem [shape: f32[1,128], index: 6, kind: input, shape index: {}]   ;;  %s2072_s7 = inlined_call_operand.vmem [shape: bf16[128,128], index: 7, kind: input, shape index: {}]   ;;  %s2073_s8 = inlined_call_operand.vmem [shape: f32[1,128], index: 8, kind: input, shape index: {}]   ;;  %s2074_s9 = inlined_call_operand.hbm [shape: f32[256,128], index: 9, kind: output, shape index: {}]  }
   0x1   :  { %16 = vsyncpa [#allocation3 + $0x1], 0  ;;  %s1761_s30 = smov 0   ;;  %s1763_s10 = smov 0  }
   0x2   :  { %s1765_s11 = smov 0   ;;  %s1767_s12 = smov 0  }
   0x3 LB: > { %s1782_s13 = sadd.s32 4294967295, %s1706_s12   ;;  %s1271_s14 = sadd.s32 4294967294, %s1706_s12   ;;  %s1706_s12 = sphi %s1767_s12, %s2080_s12   ;;  %s1702_s11 = sphi %s1765_s11, %s2079_s11   ;;  %s1698_s10 = sphi %s1763_s10, %s2078_s10   ;;  %s1694_s30 = sphi %s1761_s30, %s2077_s30  }
   0x4   : > { %s1786_s15 = sadd.s32 1, %s1706_s12   ;;  %s228_s16 = sadd.s32 1, %s1702_s11 }
   0x5   : > { %s225_s17 = ssub.s32 %s1706_s12, %s1786_s15  ;;  %p238_p0 = scmp.ne.s32.totalorder %s1702_s11, %s1698_s10 }
   0x6   : > { %p226_p1 = scmp.eq.s32.totalorder %s225_s17, 0  ;;  %p239_p2 = scmp.eq.s32.totalorder %s1782_s13, 1 }
   0x7   : > { %p244_p3 = scmp.ne.s32.totalorder %s1698_s10, %s1694_s30  ;;  %p245_p4 = scmp.eq.s32.totalorder %s1271_s14, 1 }
   0x8   : > { %s1797_s18 = scalar_select %p226_p1, %s1702_s11, %s228_s16  }
   0x9   : > { %p1799_p5 = por %p239_p2, %p238_p0  ;;  %p1803_p6 = por %p245_p4, %p244_p3 }
   0xa   : > { %p1274_p7 = scmp.ge.s32.totalorder %s1706_s12, 1  ;;  %p302_p8 = scmp.lt.s32.totalorder %s1706_s12, 3 }
   0xc   : > { %p303_p9 = pnand %p1274_p7, %p302_p8 }
   0xd   : > { %v1562_v0 = vld [vmem:[%s2068_s3] sm:$0xff] (!%p303_p9)   ;;  %s1276_s23 = sshll.u32 (!%p303_p9), %s1782_s13, 4  ;;  %v1565_v3 = vld [vmem:[%s2070_s5 + $0x8] sm:$0xff] (!%p303_p9)   ;;  %v1566_v4 = vld [vmem:[%s2070_s5 + $0x10] sm:$0xff] (!%p303_p9)   ;;  %vm415_vm0 = vcmask (!%p303_p9), 130048   ;;  %s1338_s27 = sshll.u32 (!%p303_p9), %s1782_s13, 11 }
   0xe   : > { %306 = sbr.rel (%p303_p9) target bundleno = 787 (0x313), region = 56  ;;  %p344_p10 = scmp.lt.s32.totalorder (!%p303_p9), %s1276_s23, 31  ;;  %1389 = vmatprep.subr.bf16.mxu0 (!%p303_p9), %v1562_v0  ;;  %v1563_v1 = vld [vmem:[%s2067_s2] sm:$0xff] (!%p303_p9)   ;;  %v1567_v14 = vld [vmem:[%s2070_s5 + $0x18] sm:$0xff] (!%p303_p9)   ;;  %v1569_v24 = vld [vmem:[%s2070_s5 + $0x28] sm:$0xff] (!%p303_p9)  }
   0xf   : > { %1390 = vmatpush3.bf16.msra.mxu0 (!%p303_p9), %v1562_v0  ;;  %v1564_v2 = vld [vmem:[%s2070_s5] sm:$0xff] (!%p303_p9)   ;;  %v1570_v56 = vld [vmem:[%s2070_s5 + $0x30] sm:$0xff] (!%p303_p9)   ;;  %v1571_v57 = vld [vmem:[%s2070_s5 + $0x38] sm:$0xff] (!%p303_p9)   ;;  %s2015_s17 = scalar_lea.hbm (!%p303_p9), %s2074_s9, %s1338_s27 }
  0x10   : > { %1407 = vmatprep.subr.bf16.mxu0 (!%p303_p9), %v1563_v1  ;;  %1425 = vmatprep.subr.bf16.mxu1 (!%p303_p9), %v1564_v2  ;;  %v1568_v21 = vld [vmem:[%s2070_s5 + $0x20] sm:$0xff] (!%p303_p9)   ;;  %v1573_v59 = vld [vmem:[%s2072_s7 + $0x8] sm:$0xff] (!%p303_p9)   ;;  %v1574_v60 = vld [vmem:[%s2072_s7 + $0x10] sm:$0xff] (!%p303_p9)  }
  0x11   : > { %1426 = vmatpush3.bf16.msra.mxu1 (!%p303_p9), %v1564_v2  ;;  %v1572_v58 = vld [vmem:[%s2072_s7] sm:$0xff] (!%p303_p9)   ;;  %v1917_v61 = vld [vmem:[%s2072_s7 + $0x18] sm:$0xff] (!%p303_p9)   ;;  %v1930_v63 = vld [vmem:[%s2072_s7 + $0x28] sm:$0xff] (!%p303_p9)  }
  0x12   : > { %1427 = vmatprep.subr.bf16.mxu1 (!%p303_p9), %v1565_v3  ;;  %v1923_v62 = vld [vmem:[%s2072_s7 + $0x20] sm:$0xff] (!%p303_p9)  }
  0x13   : > { %v1938_v0 = vld [vmem:[%s2069_s4] ss:$0 sm:$0xff] (!%p303_p9) }
  0x15   : > { %s2082_s23 = smov (!%p344_p10, %s1276_s23), 31  ;;  %1428 = vmatpush3.bf16.msra.mxu1 %v1565_v3 }
  0x16   : > { %s1277_s14 = sshll.u32 %s2082_s23, 3  ;;  %1429 = vmatprep.subr.bf16.mxu1 %v1566_v4 }
  0x17   : > { %s1830_s21 = scalar_lea.vmem %s2066_s1, %s1277_s14  ;;  %s1868_s24 = scalar_lea.vmem %s2065_s0, %s1277_s14 }
  0x18   : > { %v381_v5 = vld [vmem:[%s1830_s21] sm:$0xff]  ;;  %v382_v6 = vld [vmem:[%s1830_s21 + $0x8] sm:$0xff]  ;;  %v383_v7 = vld [vmem:[%s1830_s21 + $0x10] sm:$0xff] }
  0x19   : > { %v397_v8 = vpack.c.bf16 %v382_v6, %v381_v5  ;;  %v384_v9 = vld [vmem:[%s1830_s21 + $0x18] sm:$0xff]  ;;  %v385_v10 = vld [vmem:[%s1830_s21 + $0x20] sm:$0xff]  ;;  %v386_v11 = vld [vmem:[%s1830_s21 + $0x28] sm:$0xff]  ;;  %1430 = vmatpush3.bf16.msra.mxu1 %v1566_v4 }
  0x1a   : > { %v398_v12 = vpack.c.bf16 %v384_v9, %v383_v7  ;;  %v399_v13 = vpack.c.bf16 %v386_v11, %v385_v10  ;;  %v387_v15 = vld [vmem:[%s1830_s21 + $0x30] sm:$0xff]  ;;  %v388_v16 = vld [vmem:[%s1830_s21 + $0x38] sm:$0xff]  ;;  %v389_v17 = vld [vmem:[%s1830_s21 + $0x40] sm:$0xff]  ;;  %1431 = vmatprep.subr.bf16.mxu1 %v1567_v14 }
  0x1b   : > { %1391 = vmatprep.mubr.msk.bf16.mxu0 %vm415_vm0, %v397_v8  ;;  %v390_v18 = vld [vmem:[%s1830_s21 + $0x48] sm:$0xff]  ;;  %v400_v19 = vpack.c.bf16 %v388_v16, %v387_v15  ;;  %v391_v22 = vld [vmem:[%s1830_s21 + $0x50] sm:$0xff]  ;;  %v392_v23 = vld [vmem:[%s1830_s21 + $0x58] sm:$0xff] }
  0x1c   : > { %1392 = vmatmul.mubr.msk.bf16.vlgmr.msra.gmra.mrb[0].mxu0 %vm415_vm0, %v398_v12  ;;  %v401_v20 = vpack.c.bf16 %v390_v18, %v389_v17  ;;  %v393_v25 = vld [vmem:[%s1830_s21 + $0x60] sm:$0xff]  ;;  %v394_v26 = vld [vmem:[%s1830_s21 + $0x68] sm:$0xff]  ;;  %v402_v27 = vpack.c.bf16 %v392_v23, %v391_v22  ;;  %v395_v29 = vld [vmem:[%s1830_s21 + $0x70] sm:$0xff] }
  0x1d   : > { %1408 = vmatpush3.bf16.msra.mxu0 %v1563_v1  ;;  %1395 = vmatprep.mubr.msk.bf16.mxu0 %vm415_vm0, %v399_v13  ;;  %v403_v28 = vpack.c.bf16 %v394_v26, %v393_v25  ;;  %v396_v30 = vld [vmem:[%s1830_s21 + $0x78] sm:$0xff]  ;;  %v357_v31 = vld [vmem:[%s1868_s24] sm:$0xff]  ;;  %v358_v32 = vld [vmem:[%s1868_s24 + $0x8] sm:$0xff]  ;;  %s340_s21 = sand.u32 1, %s1698_s10  }
  0x1e   : > { %1432 = vmatpush3.bf16.msra.mxu1 %v1567_v14  ;;  %v404_v33 = vpack.c.bf16 %v396_v30, %v395_v29  ;;  %v373_v34 = vpack.c.bf16 %v358_v32, %v357_v31  ;;  %v359_v35 = vld [vmem:[%s1868_s24 + $0x10] sm:$0xff]  ;;  %v360_v36 = vld [vmem:[%s1868_s24 + $0x18] sm:$0xff]  ;;  %v361_v37 = vld [vmem:[%s1868_s24 + $0x20] sm:$0xff]  ;;  %1457 = vmatprep.subr.bf16.mxu0 %v1572_v58  ;;  %s1275_s25 = sshll.u32 %s340_s21, 7  ;;  %s2024_s13 = scalar_lea.sflag [#allocation3], %s340_s21 }
  0x1f   : > { %1433 = vmatprep.subr.bf16.mxu1 %v1568_v21  ;;  %v362_v38 = vld [vmem:[%s1868_s24 + $0x28] sm:$0xff]  ;;  %v374_v39 = vpack.c.bf16 %v360_v36, %v359_v35  ;;  %v363_v41 = vld [vmem:[%s1868_s24 + $0x30] sm:$0xff]  ;;  %v364_v42 = vld [vmem:[%s1868_s24 + $0x38] sm:$0xff]  ;;  %s1995_s26 = scalar_lea.vmem [#allocation2], %s1275_s25 }
  0x20   : > { %v375_v40 = vpack.c.bf16 %v362_v38, %v361_v37  ;;  %v365_v43 = vld [vmem:[%s1868_s24 + $0x40] sm:$0xff]  ;;  %v366_v44 = vld [vmem:[%s1868_s24 + $0x48] sm:$0xff]  ;;  %v376_v45 = vpack.c.bf16 %v364_v42, %v363_v41  ;;  %v367_v47 = vld [vmem:[%s1868_s24 + $0x50] sm:$0xff]  ;;  %s1197_s28 = sshll.u32 %s1995_s26, 4  ;;  %s2017_s28 = int_to_ptr.vmem [resolvable:$true] %s1197_s28 }
  0x21   : > { %v377_v46 = vpack.c.bf16 %v366_v44, %v365_v43  ;;  %v368_v48 = vld [vmem:[%s1868_s24 + $0x58] sm:$0xff]  ;;  %v369_v49 = vld [vmem:[%s1868_s24 + $0x60] sm:$0xff]  ;;  %v370_v50 = vld [vmem:[%s1868_s24 + $0x68] sm:$0xff]  ;;  %s1644_s22 = scalar_lea.vmem %s2017_s28, 2048 }
  0x22   : > { %1434 = vmatpush3.bf16.msra.mxu1 %v1568_v21  ;;  %v378_v51 = vpack.c.bf16 %v368_v48, %v367_v47  ;;  %v379_v52 = vpack.c.bf16 %v370_v50, %v369_v49  ;;  %v371_v53 = vld [vmem:[%s1868_s24 + $0x70] sm:$0xff]  ;;  %v372_v54 = vld [vmem:[%s1868_s24 + $0x78] sm:$0xff]  ;;  %p1645_p11 = scmp.ne.s32.totalorder %s2017_s28, %s1644_s22  ;;  %s1708_s24 = smov [#allocation2]  }
  0x23   : > { %1435 = vmatprep.subr.bf16.mxu1 %v1569_v24  ;;  %v380_v55 = vpack.c.bf16 %v372_v54, %v371_v53  ;;  %s1648_s23 = sshll.u32 %s1708_s24, 4  ;;  %s1649_s23 = int_to_ptr.vmem [resolvable:$false] %s1648_s23 }
  0x24   : > { %1396 = vmatmul.mubr.msk.bf16.gmra.mrb[4].mxu0 %vm415_vm0, %v400_v19  ;;  %p1646_p12 = pnand %p1645_p11, %p1799_p5  ;;  %s1650_s14 = scalar_lea.vmem %s1649_s23, 4096 }
  0x25   : > { %1399 = vmatprep.mubr.msk.bf16.mxu0 %vm415_vm0, %v401_v20  ;;  %p1651_p0 = scmp.lt.s32.totalorder %s2017_s28, %s1649_s23  ;;  %p1652_p1 = scmp.lt.s32.totalorder %s1650_s14, %s1644_s22 }
  0x26   : > { %1436 = vmatpush3.bf16.msra.mxu1 %v1569_v24  ;;  %p1647_p13 = pneg %p1646_p12 }
  0x27   : > { %1437 = vmatprep.subr.bf16.mxu1 %v1570_v56  ;;  %p1653_p2 = por %p1652_p1, %p1651_p0 }
  0x29   : > { %p1654_p3 = pnand %p1653_p2, %p1647_p13 }
  0x2a   : > { %1438 = vmatpush3.bf16.msra.mxu1 %v1570_v56 }
  0x2b   : > { %1439 = vmatprep.subr.bf16.mxu1 %v1571_v57 }
  0x2c   : > { %1400 = vmatmul.mubr.msk.bf16.gmra.mrb[8].mxu0 %vm415_vm0, %v402_v27 }
  0x2d   : > { %1403 = vmatprep.mubr.msk.bf16.mxu0 %vm415_vm0, %v403_v28 }
  0x2e   : > { %1440 = vmatpush3.bf16.msra.mxu1 %v1571_v57  ;;  %v1578_v57 = vld [vmem:[%s2072_s7 + $0x30] sm:$0xff]  }
  0x2f   : > { %1489 = vmatprep.subr.bf16.mxu1 %v1572_v58 }
  0x34   : > { %1404 = vmatmul.mubr.msk.bf16.gmra.mrb[12].mxu0 %vm415_vm0, %v404_v33 }
  0x35   : > { %1409 = vmatprep.mubr.msk.bf16.mxu0 %vm415_vm0, %v373_v34 }
  0x3c   : > { %1410 = vmatmul.mubr.msk.bf16.vlgmr.msra.gmra.mrb[0].mxu0 %vm415_vm0, %v374_v39 }
  0x3d   : > { %1413 = vmatprep.mubr.msk.bf16.mxu0 %vm415_vm0, %v375_v40  ;;  %1458 = vmatpush3.bf16.msra.mxu0 %v1572_v58 }
  0x3e   : > { %1459 = vmatprep.subr.bf16.mxu0 %v1573_v59 }
  0x41   : > { %1460 = vmatpush3.bf16.msra.mxu0 %v1573_v59 }
  0x42   : > { %1461 = vmatprep.subr.bf16.mxu0 %v1574_v60 }
  0x44   : > { %1414 = vmatmul.mubr.msk.bf16.gmra.mrb[4].mxu0 %vm415_vm0, %v376_v45 }
  0x45   : > { %1417 = vmatprep.mubr.msk.bf16.mxu0 %vm415_vm0, %v377_v46  ;;  %1462 = vmatpush3.bf16.msra.mxu0 %v1574_v60 }
  0x46   : > { %1463 = vmatprep.subr.bf16.mxu0 %v1917_v61 }
  0x49   : > { %1464 = vmatpush3.bf16.msra.mxu0 %v1917_v61 }
  0x4a   : > { %1465 = vmatprep.subr.bf16.mxu0 %v1923_v62 }
  0x4c   : > { %1418 = vmatmul.mubr.msk.bf16.gmra.mrb[8].mxu0 %vm415_vm0, %v378_v51 }
  0x4d   : > { %1421 = vmatprep.mubr.msk.bf16.mxu0 %vm415_vm0, %v379_v52  ;;  %1466 = vmatpush3.bf16.msra.mxu0 %v1923_v62 }
  0x4e   : > { %1467 = vmatprep.subr.bf16.mxu0 %v1930_v63 }
  0x51   : > { %1468 = vmatpush3.bf16.msra.mxu0 %v1930_v63 }
  0x52   : > { %1469 = vmatprep.subr.bf16.mxu0 %v1578_v57 }
  0x54   : > { %1422 = vmatmul.mubr.msk.bf16.gmra.mrb[12].mxu0 %vm415_vm0, %v380_v55 }
  0x55   : > { %1470 = vmatpush3.bf16.msra.mxu0 %v1578_v57 }
 0x10f   : > { %v1411_v1 = vpop.f32.mrb[0].mxu0 }
 0x110   : > { %v673_v2 = vadd.f32 %v1411_v1, %v1938_v0  ;;  %v601_v3 = vpop.f32.mrb[1].mxu0 }
 0x111   : > { %v671_v4 = vadd.f32 %v1938_v0, %v601_v3  ;;  %v1412_v5 = vpop.f32.mrb[2].mxu0 }
 0x112   : > { %v674_v6 = vadd.f32 %v1412_v5, %v1938_v0  ;;  %v604_v7 = vpop.f32.mrb[3].mxu0  ;;  %v689_v9 = vmax.f32 %v673_v2, 0.0 }
 0x113   : > { %v672_v8 = vadd.f32 %v1938_v0, %v604_v7  ;;  %v687_v11 = vmax.f32 %v671_v4, 0.0 }
 0x114   : > { %v690_v10 = vmax.f32 %v674_v6, 0.0 }
 0x115   : > { %v688_v12 = vmax.f32 %v672_v8, 0.0 }
 0x116   : > { %v704_v13 = vpack.c.bf16 %v690_v10, %v689_v9 }
 0x117   : > { %v1415_v14 = vpop.f32.mrb[4].mxu0  ;;  %v703_v15 = vpack.c.bf16 %v688_v12, %v687_v11 }
 0x118   : > { %v677_v16 = vadd.f32 %v1415_v14, %v1938_v0  ;;  %v617_v17 = vpop.f32.mrb[5].mxu0 }
 0x119   : > { %v675_v18 = vadd.f32 %v1938_v0, %v617_v17  ;;  %v1416_v19 = vpop.f32.mrb[6].mxu0  ;;  %1441 = vmatprep.mubr.bf16.mxu1 %v703_v15 }
 0x11a   : > { %v678_v20 = vadd.f32 %v1416_v19, %v1938_v0  ;;  %v620_v21 = vpop.f32.mrb[7].mxu0  ;;  %1442 = vmatmul.mubr.bf16.vlgmr.msra.gmra.mrb[0].mxu1 %v704_v13  ;;  %v693_v23 = vmax.f32 %v677_v16, 0.0 }
 0x11b   : > { %v676_v22 = vadd.f32 %v1938_v0, %v620_v21  ;;  %1497 = vmatpush3.bf16.msra.mxu1 %v1572_v58  ;;  %v691_v25 = vmax.f32 %v675_v18, 0.0  ;;  %v1579_v58 = vld [vmem:[%s2072_s7 + $0x38] sm:$0xff]  }
 0x11c   : > { %v694_v24 = vmax.f32 %v678_v20, 0.0  ;;  %1490 = vmatprep.subr.bf16.mxu1 %v1573_v59  ;;  %1471 = vmatprep.subr.bf16.mxu0 %v1579_v58 }
 0x11d   : > { %v692_v26 = vmax.f32 %v676_v22, 0.0  ;;  %1472 = vmatpush3.bf16.msra.mxu0 %v1579_v58 }
 0x11e   : > { %v706_v27 = vpack.c.bf16 %v694_v24, %v693_v23 }
 0x11f   : > { %v705_v28 = vpack.c.bf16 %v692_v26, %v691_v25  ;;  %v1419_v29 = vpop.f32.mrb[8].mxu0  ;;  %1498 = vmatpush3.bf16.msra.mxu1 %v1573_v59  ;;  %v1299_v59 = vld [vmem:[%s2071_s6] ss:$0 sm:$0xff] }
 0x120   : > { %v681_v30 = vadd.f32 %v1419_v29, %v1938_v0  ;;  %v633_v31 = vpop.f32.mrb[9].mxu0  ;;  %1491 = vmatprep.subr.bf16.mxu1 %v1574_v60 }
 0x121   : > { %v679_v32 = vadd.f32 %v1938_v0, %v633_v31  ;;  %v1420_v33 = vpop.f32.mrb[10].mxu0  ;;  %1445 = vmatprep.mubr.bf16.mxu1 %v705_v28 }
 0x122   : > { %v682_v34 = vadd.f32 %v1420_v33, %v1938_v0  ;;  %v636_v35 = vpop.f32.mrb[11].mxu0  ;;  %1446 = vmatmul.mubr.bf16.gmra.mrb[4].mxu1 %v706_v27  ;;  %v697_v37 = vmax.f32 %v681_v30, 0.0 }
 0x123   : > { %v680_v36 = vadd.f32 %v1938_v0, %v636_v35  ;;  %1499 = vmatpush3.bf16.msra.mxu1 %v1574_v60  ;;  %v695_v39 = vmax.f32 %v679_v32, 0.0 }
 0x124   : > { %v698_v38 = vmax.f32 %v682_v34, 0.0  ;;  %1492 = vmatprep.subr.bf16.mxu1 %v1917_v61 }
 0x125   : > { %v696_v40 = vmax.f32 %v680_v36, 0.0 }
 0x126   : > { %v708_v41 = vpack.c.bf16 %v698_v38, %v697_v37 }
 0x127   : > { %v707_v42 = vpack.c.bf16 %v696_v40, %v695_v39  ;;  %v1423_v43 = vpop.f32.mrb[12].mxu0  ;;  %1500 = vmatpush3.bf16.msra.mxu1 %v1917_v61 }
 0x128   : > { %v685_v44 = vadd.f32 %v1423_v43, %v1938_v0  ;;  %v649_v45 = vpop.f32.mrb[13].mxu0  ;;  %1493 = vmatprep.subr.bf16.mxu1 %v1923_v62 }
 0x129   : > { %v683_v46 = vadd.f32 %v1938_v0, %v649_v45  ;;  %v1424_v47 = vpop.f32.mrb[14].mxu0  ;;  %1449 = vmatprep.mubr.bf16.mxu1 %v707_v42 }
 0x12a   : > { %v686_v48 = vadd.f32 %v1424_v47, %v1938_v0  ;;  %v652_v49 = vpop.f32.mrb[15].mxu0  ;;  %1450 = vmatmul.mubr.bf16.gmra.mrb[8].mxu1 %v708_v41  ;;  %v701_v51 = vmax.f32 %v685_v44, 0.0 }
 0x12b   : > { %v684_v50 = vadd.f32 %v1938_v0, %v652_v49  ;;  %1501 = vmatpush3.bf16.msra.mxu1 %v1923_v62  ;;  %v699_v53 = vmax.f32 %v683_v46, 0.0 }
 0x12c   : > { %v702_v52 = vmax.f32 %v686_v48, 0.0  ;;  %1494 = vmatprep.subr.bf16.mxu1 %v1930_v63 }
 0x12d   : > { %v700_v54 = vmax.f32 %v684_v50, 0.0 }
 0x12e   : > { %v710_v55 = vpack.c.bf16 %v702_v52, %v701_v51  ;;  %v1974_v52 = vld [vmem:[%s2073_s8] ss:$0 sm:$0xff] }
 0x12f   : > { %v709_v56 = vpack.c.bf16 %v700_v54, %v699_v53  ;;  %1502 = vmatpush3.bf16.msra.mxu1 %v1930_v63 }
 0x130   : > { %1495 = vmatprep.subr.bf16.mxu1 %v1578_v57 }
 0x131   : > { %1453 = vmatprep.mubr.bf16.mxu1 %v709_v56 }
 0x132   : > { %1454 = vmatmul.mubr.bf16.gmra.mrb[12].mxu1 %v710_v55 }
 0x133   : > { %1503 = vmatpush3.bf16.msra.mxu1 %v1578_v57 }
 0x134   : > { %1496 = vmatprep.subr.bf16.mxu1 %v1579_v58 }
 0x137   : > { %1504 = vmatpush3.bf16.msra.mxu1 %v1579_v58 }
 0x1ed   : > { %v1443_v60 = vpop.f32.mrb[0].mxu1 }
 0x1ee   : > { %v825_v61 = vadd.f32 %v1443_v60, %v1299_v59  ;;  %v816_v62 = vpop.f32.mrb[1].mxu1 }
 0x1ef   : > { %v817_v63 = vadd.f32 %v1299_v59, %v816_v62  ;;  %v1444_v0 = vpop.f32.mrb[2].mxu1 }
 0x1f0   : > { %v828_v1 = vadd.f32 %v1444_v0, %v1299_v59  ;;  %v819_v2 = vpop.f32.mrb[3].mxu1  ;;  %v881_v4 = vmax.f32 %v825_v61, 0.0 }
 0x1f1   : > { %v820_v3 = vadd.f32 %v1299_v59, %v819_v2  ;;  %v879_v6 = vmax.f32 %v817_v63, 0.0 }
 0x1f2   : > { %v882_v5 = vmax.f32 %v828_v1, 0.0 }
 0x1f3   : > { %v880_v7 = vmax.f32 %v820_v3, 0.0 }
 0x1f4   : > { %v896_v8 = vpack.c.bf16 %v882_v5, %v881_v4 }
 0x1f5   : > { %v895_v9 = vpack.c.bf16 %v880_v7, %v879_v6  ;;  %v1447_v10 = vpop.f32.mrb[4].mxu1 }
 0x1f6   : > { %v841_v11 = vadd.f32 %v1447_v10, %v1299_v59  ;;  %v832_v12 = vpop.f32.mrb[5].mxu1 }
 0x1f7   : > { %v833_v13 = vadd.f32 %v1299_v59, %v832_v12  ;;  %v1448_v14 = vpop.f32.mrb[6].mxu1  ;;  %1473 = vmatprep.mubr.bf16.mxu0 %v895_v9 }
 0x1f8   : > { %v844_v15 = vadd.f32 %v1448_v14, %v1299_v59  ;;  %v835_v16 = vpop.f32.mrb[7].mxu1  ;;  %1474 = vmatmul.mubr.bf16.vlgmr.msra.gmra.mrb[16].mxu0 %v896_v8  ;;  %v885_v18 = vmax.f32 %v841_v11, 0.0 }
 0x1f9   : > { %v836_v17 = vadd.f32 %v1299_v59, %v835_v16  ;;  %v883_v20 = vmax.f32 %v833_v13, 0.0 }
 0x1fa   : > { %v886_v19 = vmax.f32 %v844_v15, 0.0 }
 0x1fb   : > { %v884_v21 = vmax.f32 %v836_v17, 0.0 }
 0x1fc   : > { %v898_v22 = vpack.c.bf16 %v886_v19, %v885_v18 }
 0x1fd   : > { %v897_v23 = vpack.c.bf16 %v884_v21, %v883_v20  ;;  %v1451_v24 = vpop.f32.mrb[8].mxu1 }
 0x1fe   : > { %v857_v25 = vadd.f32 %v1451_v24, %v1299_v59  ;;  %v848_v26 = vpop.f32.mrb[9].mxu1 }
 0x1ff   : > { %v849_v27 = vadd.f32 %v1299_v59, %v848_v26  ;;  %v1452_v28 = vpop.f32.mrb[10].mxu1  ;;  %1477 = vmatprep.mubr.bf16.mxu1 %v897_v23 }
 0x200   : > { %v860_v29 = vadd.f32 %v1452_v28, %v1299_v59  ;;  %v851_v30 = vpop.f32.mrb[11].mxu1  ;;  %1478 = vmatmul.mubr.bf16.vlgmr.msra.gmra.mrb[16].mxu1 %v898_v22  ;;  %v889_v32 = vmax.f32 %v857_v25, 0.0 }
 0x201   : > { %v852_v31 = vadd.f32 %v1299_v59, %v851_v30  ;;  %v887_v34 = vmax.f32 %v849_v27, 0.0 }
 0x202   : > { %v890_v33 = vmax.f32 %v860_v29, 0.0 }
 0x203   : > { %v888_v35 = vmax.f32 %v852_v31, 0.0 }
 0x204   : > { %v900_v36 = vpack.c.bf16 %v890_v33, %v889_v32 }
 0x205   : > { %v899_v37 = vpack.c.bf16 %v888_v35, %v887_v34  ;;  %v1455_v38 = vpop.f32.mrb[12].mxu1 }
 0x206   : > { %v873_v39 = vadd.f32 %v1455_v38, %v1299_v59  ;;  %v864_v40 = vpop.f32.mrb[13].mxu1 }
 0x207   : > { %v865_v41 = vadd.f32 %v1299_v59, %v864_v40  ;;  %v1456_v42 = vpop.f32.mrb[14].mxu1  ;;  %1481 = vmatprep.mubr.bf16.mxu1 %v899_v37 }
 0x208   : > { %v876_v43 = vadd.f32 %v1456_v42, %v1299_v59  ;;  %v867_v44 = vpop.f32.mrb[15].mxu1  ;;  %1482 = vmatmul.mubr.bf16.gmra.mrb[20].mxu1 %v900_v36  ;;  %v893_v46 = vmax.f32 %v873_v39, 0.0 }
 0x209   : > { %v868_v45 = vadd.f32 %v1299_v59, %v867_v44  ;;  %v891_v48 = vmax.f32 %v865_v41, 0.0 }
 0x20a   : > { %v894_v47 = vmax.f32 %v876_v43, 0.0 }
 0x20b   : > { %v892_v49 = vmax.f32 %v868_v45, 0.0 }
 0x20c   : > { %v902_v50 = vpack.c.bf16 %v894_v47, %v893_v46 }
 0x20d   : > { %v901_v51 = vpack.c.bf16 %v892_v49, %v891_v48 }
 0x20f   : > { %1485 = vmatprep.mubr.bf16.mxu1 %v901_v51 }
 0x210   : > { %1486 = vmatmul.mubr.bf16.gmra.mrb[24].mxu1 %v902_v50 }
 0x2cb   : > { %v1475_v53 = vpop.f32.mrb[16].mxu0 }
 0x2cc   : > { %v1017_v54 = vadd.f32 %v1475_v53, %v1974_v52  ;;  %v1008_v55 = vpop.f32.mrb[17].mxu0 }
 0x2cd   : > { %v1009_v56 = vadd.f32 %v1974_v52, %v1008_v55  ;;  %v1476_v57 = vpop.f32.mrb[18].mxu0 }
 0x2ce   : > { %v1319_v58 = vmul.f32 -1.442695, %v1017_v54  ;;  %v1020_v59 = vadd.f32 %v1476_v57, %v1974_v52  ;;  %v1011_v60 = vpop.f32.mrb[19].mxu0 }
 0x2cf   : > { %v1317_v61 = vmul.f32 -1.442695, %v1009_v56  ;;  %v1012_v62 = vadd.f32 %v1974_v52, %v1011_v60 }
 0x2d0   : > { %1580 = vpow2.f32 %v1319_v58  ;;  %v1320_v63 = vmul.f32 -1.442695, %v1020_v59 }
 0x2d1   : > { %1582 = vpow2.f32 %v1317_v61  ;;  %v1318_v0 = vmul.f32 -1.442695, %v1012_v62 }
 0x2d2   : > { %1584 = vpow2.f32 %v1320_v63 }
 0x2d3   : > { %1586 = vpow2.f32 %v1318_v0  ;;  %v1479_v1 = vpop.f32.mrb[16].mxu1 }
 0x2d4   : > { %v1033_v2 = vadd.f32 %v1479_v1, %v1974_v52  ;;  %v1024_v3 = vpop.f32.mrb[17].mxu1 }
 0x2d5   : > { %v1025_v4 = vadd.f32 %v1974_v52, %v1024_v3  ;;  %v1480_v5 = vpop.f32.mrb[18].mxu1 }
 0x2d6   : > { %v1323_v6 = vmul.f32 -1.442695, %v1033_v2  ;;  %v1036_v7 = vadd.f32 %v1480_v5, %v1974_v52  ;;  %v1027_v8 = vpop.f32.mrb[19].mxu1 }
 0x2d7   : > { %v1321_v9 = vmul.f32 -1.442695, %v1025_v4  ;;  %v1028_v10 = vadd.f32 %v1974_v52, %v1027_v8 }
 0x2d8   : > { %1588 = vpow2.f32 %v1323_v6  ;;  %v1324_v11 = vmul.f32 -1.442695, %v1036_v7 }
 0x2d9   : > { %1590 = vpow2.f32 %v1321_v9  ;;  %v1322_v12 = vmul.f32 -1.442695, %v1028_v10 }
 0x2da   : > { %v1581_v13 = vpop.eup %1580  ;;  %1592 = vpow2.f32 %v1324_v11 }
 0x2db   : > { %v1583_v14 = vpop.eup %1582  ;;  %v1121_v15 = vadd.f32 1.0, %v1581_v13  ;;  %1594 = vpow2.f32 %v1322_v12  ;;  %v1483_v16 = vpop.f32.mrb[20].mxu1 }
 0x2dc   : > { %v1585_v17 = vpop.eup %1584  ;;  %v1119_v18 = vadd.f32 1.0, %v1583_v14  ;;  %v1049_v19 = vadd.f32 %v1483_v16, %v1974_v52  ;;  %v1040_v20 = vpop.f32.mrb[21].mxu1 }
 0x2dd   : > { %v1587_v21 = vpop.eup %1586  ;;  %1596 = vrcp.f32 %v1121_v15  ;;  %v1122_v22 = vadd.f32 1.0, %v1585_v17  ;;  %v1041_v23 = vadd.f32 %v1974_v52, %v1040_v20  ;;  %v1484_v24 = vpop.f32.mrb[22].mxu1 }
 0x2de   : > { %1598 = vrcp.f32 %v1119_v18  ;;  %v1120_v25 = vadd.f32 1.0, %v1587_v21  ;;  %v1327_v26 = vmul.f32 -1.442695, %v1049_v19  ;;  %v1052_v27 = vadd.f32 %v1484_v24, %v1974_v52  ;;  %v1043_v28 = vpop.f32.mrb[23].mxu1 }
 0x2df   : > { %1600 = vrcp.f32 %v1122_v22  ;;  %v1325_v29 = vmul.f32 -1.442695, %v1041_v23  ;;  %v1044_v30 = vadd.f32 %v1974_v52, %v1043_v28 }
 0x2e0   : > { %1602 = vrcp.f32 %v1120_v25  ;;  %v1328_v31 = vmul.f32 -1.442695, %v1052_v27 }
 0x2e1   : > { %1604 = vpow2.f32 %v1327_v26  ;;  %v1326_v32 = vmul.f32 -1.442695, %v1044_v30 }
 0x2e2   : > { %v1589_v33 = vpop.eup %1588  ;;  %1606 = vpow2.f32 %v1325_v29 }
 0x2e3   : > { %v1591_v34 = vpop.eup %1590  ;;  %v1125_v35 = vadd.f32 1.0, %v1589_v33  ;;  %1608 = vpow2.f32 %v1328_v31  ;;  %v1487_v36 = vpop.f32.mrb[24].mxu1 }
 0x2e4   : > { %v1593_v37 = vpop.eup %1592  ;;  %v1123_v38 = vadd.f32 1.0, %v1591_v34  ;;  %1610 = vpow2.f32 %v1326_v32  ;;  %v1065_v39 = vadd.f32 %v1487_v36, %v1974_v52  ;;  %v1056_v40 = vpop.f32.mrb[25].mxu1 }
 0x2e5   : > { %v1595_v41 = vpop.eup %1594  ;;  %1612 = vrcp.f32 %v1125_v35  ;;  %v1126_v42 = vadd.f32 1.0, %v1593_v37  ;;  %v1057_v43 = vadd.f32 %v1974_v52, %v1056_v40  ;;  %v1488_v44 = vpop.f32.mrb[26].mxu1 }
 0x2e6   : > { %1614 = vrcp.f32 %v1123_v38  ;;  %v1124_v45 = vadd.f32 1.0, %v1595_v41  ;;  %v1331_v46 = vmul.f32 -1.442695, %v1065_v39  ;;  %v1068_v47 = vadd.f32 %v1488_v44, %v1974_v52  ;;  %v1059_v48 = vpop.f32.mrb[27].mxu1 }
 0x2e7   : > { %v1597_v49 = vpop.eup %1596  ;;  %1616 = vrcp.f32 %v1126_v42  ;;  %v1329_v50 = vmul.f32 -1.442695, %v1057_v43  ;;  %v1060_v51 = vadd.f32 %v1974_v52, %v1059_v48 }
 0x2e8   : > { %v1599_v53 = vpop.eup %1598  ;;  %1169 = vst [vmem:[%s1995_s26 + $0x10] sm:$0xff] %v1597_v49  ;;  %1618 = vrcp.f32 %v1124_v45  ;;  %v1332_v54 = vmul.f32 -1.442695, %v1068_v47 }
 0x2e9   : > { %v1601_v55 = vpop.eup %1600  ;;  %1167 = vst [vmem:[%s1995_s26] sm:$0xff] %v1599_v53  ;;  %1620 = vpow2.f32 %v1331_v46  ;;  %v1330_v56 = vmul.f32 -1.442695, %v1060_v51 }
 0x2ea   : > { %v1603_v57 = vpop.eup %1602  ;;  %1170 = vst [vmem:[%s1995_s26 + $0x18] sm:$0xff] %v1601_v55  ;;  %1622 = vpow2.f32 %v1329_v50 }
 0x2eb   : > { %v1605_v58 = vpop.eup %1604  ;;  %1168 = vst [vmem:[%s1995_s26 + $0x8] sm:$0xff] %v1603_v57  ;;  %1624 = vpow2.f32 %v1332_v54 }
 0x2ec   : > { %v1607_v52 = vpop.eup %1606  ;;  %v1129_v59 = vadd.f32 1.0, %v1605_v58  ;;  %1626 = vpow2.f32 %v1330_v56 }
 0x2ed   : > { %v1609_v60 = vpop.eup %1608  ;;  %v1127_v61 = vadd.f32 1.0, %v1607_v52 }
 0x2ee   : > { %v1611_v62 = vpop.eup %1610  ;;  %1628 = vrcp.f32 %v1129_v59  ;;  %v1130_v63 = vadd.f32 1.0, %v1609_v60 }
 0x2ef   : > { %v1613_v0 = vpop.eup %1612  ;;  %1630 = vrcp.f32 %v1127_v61  ;;  %v1128_v1 = vadd.f32 1.0, %v1611_v62 }
 0x2f0   : > { %v1615_v2 = vpop.eup %1614  ;;  %1173 = vst [vmem:[%s1995_s26 + $0x30] sm:$0xff] %v1613_v0  ;;  %1632 = vrcp.f32 %v1130_v63 }
 0x2f1   : > { %v1617_v3 = vpop.eup %1616  ;;  %1171 = vst [vmem:[%s1995_s26 + $0x20] sm:$0xff] %v1615_v2  ;;  %1634 = vrcp.f32 %v1128_v1 }
 0x2f2   : > { %v1619_v4 = vpop.eup %1618  ;;  %1174 = vst [vmem:[%s1995_s26 + $0x38] sm:$0xff] %v1617_v3 }
 0x2f3   : > { %v1621_v5 = vpop.eup %1620  ;;  %1172 = vst [vmem:[%s1995_s26 + $0x28] sm:$0xff] %v1619_v4 }
 0x2f4   : > { %v1623_v6 = vpop.eup %1622  ;;  %v1133_v7 = vadd.f32 1.0, %v1621_v5 }
 0x2f5   : > { %v1625_v8 = vpop.eup %1624  ;;  %v1131_v9 = vadd.f32 1.0, %v1623_v6 }
 0x2f6   : > { %v1627_v10 = vpop.eup %1626  ;;  %1636 = vrcp.f32 %v1133_v7  ;;  %v1134_v11 = vadd.f32 1.0, %v1625_v8 }
 0x2f7   : > { %1638 = vrcp.f32 %v1131_v9  ;;  %v1132_v12 = vadd.f32 1.0, %v1627_v10 }
 0x2f8   : > { %v1629_v13 = vpop.eup %1628  ;;  %1640 = vrcp.f32 %v1134_v11 }
 0x2f9   : > { %v1631_v14 = vpop.eup %1630  ;;  %1177 = vst [vmem:[%s1995_s26 + $0x50] sm:$0xff] %v1629_v13  ;;  %1642 = vrcp.f32 %v1132_v12 }
 0x2fa   : > { %v1633_v15 = vpop.eup %1632  ;;  %1175 = vst [vmem:[%s1995_s26 + $0x40] sm:$0xff] %v1631_v14 }
 0x2fb   : > { %v1635_v16 = vpop.eup %1634  ;;  %1178 = vst [vmem:[%s1995_s26 + $0x58] sm:$0xff] %v1633_v15 }
 0x2fc   : > { %1176 = vst [vmem:[%s1995_s26 + $0x48] sm:$0xff] %v1635_v16 }
 0x300   : > { %v1637_v17 = vpop.eup %1636 }
 0x301   : > { %v1639_v18 = vpop.eup %1638  ;;  %1181 = vst [vmem:[%s1995_s26 + $0x70] sm:$0xff] %v1637_v17 }
 0x302   : > { %v1641_v19 = vpop.eup %1640  ;;  %1179 = vst [vmem:[%s1995_s26 + $0x60] sm:$0xff] %v1639_v18 }
 0x303   : > { %v1643_v20 = vpop.eup %1642  ;;  %1182 = vst [vmem:[%s1995_s26 + $0x78] sm:$0xff] %v1641_v19 }
 0x304   : > { %1180 = vst [vmem:[%s1995_s26 + $0x68] sm:$0xff] %v1643_v20 }
 0x305   : > { %1657 = shalt.err (!%p1654_p3)
}
 0x306   : > { %s1658_s21 = scalar_lea.hbm %s2015_s17, 2048  ;;  %s1662_s27 = scalar_lea.hbm %s2074_s9, 4096 }
 0x307   : > { %p1659_p4 = scmp.ne.s32.totalorder %s2015_s17, %s1658_s21  ;;  %p1663_p9 = scmp.lt.u32.totalorder %s2015_s17, %s2074_s9 }
 0x308   : > { %p1664_p10 = scmp.lt.u32.totalorder %s1662_s27, %s1658_s21  ;;  %p1666_p12 = scmp.lt.u32.totalorder %s1658_s21, %s2015_s17 }
 0x309   : > { %p1660_p7 = pnand %p1659_p4, %p1799_p5 }
 0x30a   : > { %p1665_p11 = por %p1664_p10, %p1663_p9 }
 0x30b   : > { %p1661_p8 = pneg %p1660_p7 }
 0x30c   : > { %p1667_p13 = por %p1666_p12, %p1665_p11 }
 0x30e   : > { %p1668_p0 = pnand %p1667_p13, %p1661_p8 }
 0x310   : > { %1671 = shalt.err (!%p1668_p0)
}
 0x311   : > { %s1709_s22 = smov 128   ;;  %s1710_s24 = smov 8  }
 0x312   : > { %1521 = dma.vmem_to_hbm [thread:$0]  (%p1799_p5), %s2017_s28, 2048, %s2015_s17, %s2024_s13, %s1709_s22, %s1709_s22, %s1710_s24  }
 0x313 PF: > { %p1527_p1 = scmp.ge.s32.totalorder %s1706_s12, 2  ;;  %s1212_s23 = sand.u32 1, %s1694_s30  }
 0x314   : > { %s1213_s14 = scalar_lea.sflag [#allocation3], %s1212_s23 }
 0x315   : > { %p1524_p2 = pnand %p1527_p1, %p1803_p6 }
 0x317   : > { %1689 = dma.done.wait (!%p1524_p2), %s1213_s14, 2048  }
 0x318   : > { %1691 = vsyncadd (!%p1524_p2), %s1213_s14, 4294965248  ;;  %p19_p3 = scmp.ge.s32.totalorder %s1786_s15, 4   ;;  %s2077_s30 = smov %s1698_s10 }
 0x319   : > { %s2078_s10 = smov %s1702_s11  ;;  %s2079_s11 = smov %s1797_s18 }
 0x31a   : > { %s2080_s12 = smov %s1786_s15  ;;  %21 = sbr.rel (!%p19_p3) target bundleno = 3 (0x3), region = 94 }
 0x321   :  { %1218 = vsyncpa [#allocation3], 1 }
 0x322   :  { %1220 = vsyncpa [#allocation3 + $0x1], 1 }

</bundles_post_ra>
